<compile_context>
chip_gen: v7x
topology: tpu7x:2x2x1
jax: 0.10.0
libtpu: 0.0.40
codegen_flags: <defaults>
</compile_context>

<pallas_src>
import math
import jax
import jax.numpy as jnp
from jax import lax
from jax.experimental import pallas as pl
from jax.experimental.pallas import tpu as pltpu

VOCAB = 29
D_MODEL = 7
D_HIDDEN = 11
MAX_LEN = 19

# Padded / packed layout constants.
S_PAD = 24            # sequence rows, padded to a multiple of 8 (covers MAX_LEN=19)
D_IN_PAD = 8          # model dim 7 padded to 8 sublanes for the first matmul
PROJ_ROWS = 16        # hidden dim 11 padded to 16 (contraction prefix slice)
BLK = 128             # one vreg-aligned lane block per projection (K / Q / V)
W_COLS = 3 * BLK      # 384

ROW_QKV0 = 0                      # rows  0: 8  -> layer-0 fused QKV weight (8, 384)
ROW_QKV1 = ROW_QKV0 + D_IN_PAD    # rows  8:24  -> layer-1 fused QKV weight, ffw0 folded (16, 384)
ROW_VOC = ROW_QKV1 + PROJ_ROWS    # rows 24:40  -> vocab weight, ffw1 folded (16, 384)
ROW_BIAS = ROW_VOC + PROJ_ROWS    # rows 40:48  -> biases (row 40: qkv0, 41: qkv1, 42: vocab)
ROW_MASK = ROW_BIAS + 8           # rows 48:72  -> additive causal-mask bias (24, 24)
SLAB_ROWS = ROW_MASK + S_PAD      # 72

MASK_NEG = -1e30      # large-finite additive mask (exp underflows to exactly 0)


# ----------------------------------------------------------------------------- kernel
def transformer_kernel(emb_ref, slab_ref, out_ref):
    x = emb_ref[...]                                                    # (24, 8)

    w_qkv0 = slab_ref[ROW_QKV0:ROW_QKV0 + D_IN_PAD, :]                  # (8, 384)
    w_qkv1 = slab_ref[ROW_QKV1:ROW_QKV1 + PROJ_ROWS, :]                 # (16, 384)
    w_voc = slab_ref[ROW_VOC:ROW_VOC + PROJ_ROWS, 0:BLK]                # (16, 128)
    b0 = slab_ref[ROW_BIAS + 0:ROW_BIAS + 1, :]                         # (1, 384)
    b1 = slab_ref[ROW_BIAS + 1:ROW_BIAS + 2, :]                         # (1, 384)
    bv = slab_ref[ROW_BIAS + 2:ROW_BIAS + 3, 0:BLK]                     # (1, 128)
    mask_bias = slab_ref[ROW_MASK:ROW_MASK + S_PAD, 0:S_PAD]            # (24, 24)

    def attn(qkv):
        # vreg-aligned lane slices of the fused projection result.
        k = qkv[:, 0 * BLK:1 * BLK]                                     # (24, 128), lanes 0:11 valid
        q = qkv[:, 1 * BLK:2 * BLK]
        v = qkv[:, 2 * BLK:3 * BLK]
        # Q @ K^T with the transpose absorbed into the contraction (no XLU transpose).
        # Padded lanes are exactly zero, so contracting all 128 lanes is exact.
        att = lax.dot_general(q, k, (((1,), (1,)), ((), ())),
                              preferred_element_type=jnp.float32)       # (24, 24)
        att = att + mask_bias                                           # masked_fill as a vadd
        att = att - jnp.max(att, axis=1, keepdims=True)                 # softmax(dim=1)
        p = jnp.exp(att)
        denom = jnp.sum(p, axis=1, keepdims=True)
        p = p * pl.reciprocal(denom, approx=True)                       # EUP, off the VALU path
        return jnp.dot(p, v, preferred_element_type=jnp.float32)        # (24, 128), lanes 0:11 valid

    # Layer 0: one fused QKV matmul.
    qkv0 = jnp.dot(x, w_qkv0, preferred_element_type=jnp.float32) + b0  # (24, 384)
    res0 = attn(qkv0)
    # Layer 1: ffw0 already folded into w_qkv1 / b1 (exact linear fold).
    qkv1 = jnp.dot(res0[:, 0:PROJ_ROWS], w_qkv1,
                   preferred_element_type=jnp.float32) + b1             # (24, 384)
    res1 = attn(qkv1)
    # Vocab head: ffw1 folded into w_voc / bv. Output kept lane-dense (128 lanes).
    out_ref[...] = jnp.dot(res1[:, 0:PROJ_ROWS], w_voc,
                           preferred_element_type=jnp.float32) + bv     # (24, 128)


# ----------------------------------------------------------------------------- params
def get_pos_matrix():
    store = [[0.0] * D_MODEL for _ in range(MAX_LEN)]
    for pos in range(MAX_LEN):
        for i in range(0, D_MODEL, 2):
            denominator = 10000 ** (2 * i / D_MODEL)
            store[pos][i] = math.sin(pos / denominator)
            if i + 1 < D_MODEL:
                store[pos][i + 1] = math.cos(pos / denominator)
    return jnp.asarray(store, dtype=jnp.float32)


def _linear_params(key, fan_in, fan_out):
    # torch.nn.Linear default init: U(-1/sqrt(fan_in), 1/sqrt(fan_in)) for W and b.
    kw, kb = jax.random.split(key)
    bound = 1.0 / math.sqrt(fan_in)
    w = jax.random.uniform(kw, (fan_in, fan_out), jnp.float32, -bound, bound)  # (in, out)
    b = jax.random.uniform(kb, (1, fan_out), jnp.float32, -bound, bound)       # row bias
    return w, b


def init_params(seed=0):
    keys = jax.random.split(jax.random.PRNGKey(seed), 10)
    params = {}
    params["embedding"] = jax.random.normal(keys[0], (VOCAB, D_MODEL), jnp.float32)
    params["pos"] = get_pos_matrix()
    params["mask"] = jnp.tril(jnp.ones((MAX_LEN, MAX_LEN), jnp.float32))
    names = ["l0_key", "l0_qry", "l0_val", "l0_ffw",
             "l1_key", "l1_qry", "l1_val", "l1_ffw"]
    dims = [(D_MODEL, D_HIDDEN)] * 3 + [(D_HIDDEN, D_MODEL)]
    dims = dims + dims
    for i, (name, (fi, fo)) in enumerate(zip(names, dims)):
        params[name] = _linear_params(keys[1 + i], fi, fo)
    params["vocab"] = _linear_params(keys[9], D_MODEL, VOCAB)
    return params


def pack_params(params):
    """Pack all weights/biases (+ mask bias) into one pre-padded VMEM slab, done once."""
    wk0, bk0 = params["l0_key"]
    wq0, bq0 = params["l0_qry"]
    wv0, bv0 = params["l0_val"]
    wf0, bf0 = params["l0_ffw"]
    wk1, bk1 = params["l1_key"]
    wq1, bq1 = params["l1_qry"]
    wv1, bv1 = params["l1_val"]
    wf1, bf1 = params["l1_ffw"]
    wvo, bvo = params["vocab"]

    # Exact linear folds: no activation / residual between ffw and the next projections.
    wk1f = wf0 @ wk1; bk1f = bf0 @ wk1 + bk1        # (11, 11), (1, 11)
    wq1f = wf0 @ wq1; bq1f = bf0 @ wq1 + bq1
    wv1f = wf0 @ wv1; bv1f = bf0 @ wv1 + bv1
    wvof = wf1 @ wvo; bvof = bf1 @ wvo + bvo        # (11, 29), (1, 29)

    slab = jnp.zeros((SLAB_ROWS, W_COLS), jnp.float32)
    # Layer-0 fused QKV weight: one 128-lane block per projection (zero padded).
    slab = slab.at[ROW_QKV0:ROW_QKV0 + D_MODEL, 0 * BLK:0 * BLK + D_HIDDEN].set(wk0)
    slab = slab.at[ROW_QKV0:ROW_QKV0 + D_MODEL, 1 * BLK:1 * BLK + D_HIDDEN].set(wq0)
    slab = slab.at[ROW_QKV0:ROW_QKV0 + D_MODEL, 2 * BLK:2 * BLK + D_HIDDEN].set(wv0)
    # Layer-1 fused QKV weight with layer-0 ffw folded in.
    slab = slab.at[ROW_QKV1:ROW_QKV1 + D_HIDDEN, 0 * BLK:0 * BLK + D_HIDDEN].set(wk1f)
    slab = slab.at[ROW_QKV1:ROW_QKV1 + D_HIDDEN, 1 * BLK:1 * BLK + D_HIDDEN].set(wq1f)
    slab = slab.at[ROW_QKV1:ROW_QKV1 + D_HIDDEN, 2 * BLK:2 * BLK + D_HIDDEN].set(wv1f)
    # Vocab weight with layer-1 ffw folded in.
    slab = slab.at[ROW_VOC:ROW_VOC + D_HIDDEN, 0:VOCAB].set(wvof)
    # Biases (padded lanes stay exactly zero so padded contractions remain exact).
    slab = slab.at[ROW_BIAS:ROW_BIAS + 1, 0 * BLK:0 * BLK + D_HIDDEN].set(bk0)
    slab = slab.at[ROW_BIAS:ROW_BIAS + 1, 1 * BLK:1 * BLK + D_HIDDEN].set(bq0)
    slab = slab.at[ROW_BIAS:ROW_BIAS + 1, 2 * BLK:2 * BLK + D_HIDDEN].set(bv0)
    slab = slab.at[ROW_BIAS + 1:ROW_BIAS + 2, 0 * BLK:0 * BLK + D_HIDDEN].set(bk1f)
    slab = slab.at[ROW_BIAS + 1:ROW_BIAS + 2, 1 * BLK:1 * BLK + D_HIDDEN].set(bq1f)
    slab = slab.at[ROW_BIAS + 1:ROW_BIAS + 2, 2 * BLK:2 * BLK + D_HIDDEN].set(bv1f)
    slab = slab.at[ROW_BIAS + 2:ROW_BIAS + 3, 0:VOCAB].set(bvof)
    # Additive causal-mask bias: 0 where visible, -1e30 where masked.
    mask_bias = (jnp.tril(jnp.ones((S_PAD, S_PAD), jnp.float32)) - 1.0) * (-MASK_NEG)
    slab = slab.at[ROW_MASK:ROW_MASK + S_PAD, 0:S_PAD].set(mask_bias)

    return {"embedding": params["embedding"], "pos": params["pos"], "slab": slab}


# ----------------------------------------------------------------------------- wrapper
def bes_simple_transformer(tokens, packed):
    S = tokens.shape[0]
    assert S <= MAX_LEN
    # Embedding gather + positional encoding (glue; data-dependent gather stays in XLA).
    emb = jnp.take(packed["embedding"], tokens, axis=0) + packed["pos"][:S, :]   # (S, 7)
    emb_pad = jnp.zeros((S_PAD, D_IN_PAD), jnp.float32).at[:S, :D_MODEL].set(emb)

    vmem_spec = pl.BlockSpec(memory_space=pltpu.MemorySpace.VMEM)
    out = pl.pallas_call(
        transformer_kernel,
        out_shape=jax.ShapeDtypeStruct((S_PAD, BLK), jnp.float32),   # lane-dense output
        in_specs=[vmem_spec, vmem_spec],
        out_specs=vmem_spec,
    )(emb_pad, packed["slab"])
    return out[:S, :VOCAB]


# ----------------------------------------------------------------------------- reference
def reference_forward(tokens, params):
    S = tokens.shape[0]
    h = jnp.take(params["embedding"], tokens, axis=0) + params["pos"][:S, :]
    mask = params["mask"][:S, :S]

    def layer(h, prefix):
        wk, bk = params[prefix + "_key"]
        wq, bq = params[prefix + "_qry"]
        wv, bv = params[prefix + "_val"]
        wf, bf = params[prefix + "_ffw"]
        key, qry, val = h @ wk + bk, h @ wq + bq, h @ wv + bv
        att = qry @ key.T
        att = jnp.where(mask == 0.0, -jnp.inf, att)
        att = jax.nn.softmax(att, axis=1)
        return (att @ val) @ wf + bf

    h = layer(h, "l0")
    h = layer(h, "l1")
    wv, bv = params["vocab"]
    return h @ wv + bv


# ----------------------------------------------------------------------------- main
if __name__ == "__main__":
    params = init_params(seed=0)
    packed = pack_params(params)

    S = 8  # sequence length (<= 19); kernel shape is fixed at S_PAD, so S does not recompile it
    tokens = jax.random.randint(jax.random.PRNGKey(0), (S,), 0, VOCAB, dtype=jnp.int32)

    out = bes_simple_transformer(tokens, packed)
    out = jax.block_until_ready(out)

    ref = reference_forward(tokens, params)
    assert out.shape == (S, VOCAB)
    # pl.reciprocal(approx=True) in the softmax denominators contributes ~1e-4 relative
    # error; all other changes (fusion, linear folds, additive mask) are exact up to f32
    # rounding, so 1e-2 is a very generous bound.
    assert jnp.allclose(out, ref, atol=1e-2, rtol=1e-2), "mismatch vs JAX reference"
    print("KERNEL_OK")
</pallas_src>

<mosaic_0001>
module attributes {stable_mosaic.version = 11 : i64} {
  func.func @transformer_kernel(%arg0: memref<24x8xf32, #tpu.memory_space<vmem>>, %arg1: memref<72x384xf32, #tpu.memory_space<vmem>>, %arg2: memref<24x128xf32, #tpu.memory_space<vmem>>) attributes {dimension_semantics = [], scalar_prefetch = 0 : i64, scratch_operands = 0 : i64, tpu.core_type = #tpu.core_type<tc>} {
    %c0 = arith.constant 0 : index
    %c0_0 = arith.constant 0 : index
    %0 = vector.load %arg0[%c0, %c0_0] : memref<24x8xf32, #tpu.memory_space<vmem>>, vector<24x8xf32>
    %c0_1 = arith.constant 0 : index
    %c0_2 = arith.constant 0 : index
    %1 = vector.load %arg1[%c0_1, %c0_2] : memref<72x384xf32, #tpu.memory_space<vmem>>, vector<8x384xf32>
    %c8 = arith.constant 8 : index
    %c0_3 = arith.constant 0 : index
    %2 = vector.load %arg1[%c8, %c0_3] : memref<72x384xf32, #tpu.memory_space<vmem>>, vector<16x384xf32>
    %c24 = arith.constant 24 : index
    %c0_4 = arith.constant 0 : index
    %3 = vector.load %arg1[%c24, %c0_4] : memref<72x384xf32, #tpu.memory_space<vmem>>, vector<16x128xf32>
    %c40 = arith.constant 40 : index
    %c0_5 = arith.constant 0 : index
    %4 = vector.load %arg1[%c40, %c0_5] : memref<72x384xf32, #tpu.memory_space<vmem>>, vector<1x384xf32>
    %c41 = arith.constant 41 : index
    %c0_6 = arith.constant 0 : index
    %5 = vector.load %arg1[%c41, %c0_6] : memref<72x384xf32, #tpu.memory_space<vmem>>, vector<1x384xf32>
    %c42 = arith.constant 42 : index
    %c0_7 = arith.constant 0 : index
    %6 = vector.load %arg1[%c42, %c0_7] : memref<72x384xf32, #tpu.memory_space<vmem>>, vector<1x128xf32>
    %c48 = arith.constant 48 : index
    %c0_8 = arith.constant 0 : index
    %7 = vector.load %arg1[%c48, %c0_8] : memref<72x384xf32, #tpu.memory_space<vmem>>, vector<24x24xf32>
    %cst = arith.constant dense<0.000000e+00> : vector<24x384xf32>
    %8 = tpu.matmul %0, %1, %cst {dimension_numbers = #tpu.dot_dimension_numbers<[1], [0], [0], [1], [0, 0, 1, 1], [], []>} : vector<24x8xf32>, vector<8x384xf32>, vector<24x384xf32> -> vector<24x384xf32>
    %9 = vector.broadcast %4 : vector<1x384xf32> to vector<24x384xf32>
    %10 = arith.addf %8, %9 : vector<24x384xf32>
    %11 = vector.extract_strided_slice %10 {offsets = [0, 0], sizes = [24, 128], strides = [1, 1]} : vector<24x384xf32> to vector<24x128xf32>
    %12 = vector.extract_strided_slice %10 {offsets = [0, 128], sizes = [24, 128], strides = [1, 1]} : vector<24x384xf32> to vector<24x128xf32>
    %13 = vector.extract_strided_slice %10 {offsets = [0, 256], sizes = [24, 128], strides = [1, 1]} : vector<24x384xf32> to vector<24x128xf32>
    %cst_9 = arith.constant dense<0.000000e+00> : vector<24x24xf32>
    %14 = tpu.matmul %12, %11, %cst_9 {dimension_numbers = #tpu.dot_dimension_numbers<[1], [1], [0], [0], [0, 0, 1, 0], [], []>} : vector<24x128xf32>, vector<24x128xf32>, vector<24x24xf32> -> vector<24x24xf32>
    %15 = arith.addf %14, %7 : vector<24x24xf32>
    %cst_10 = arith.constant dense<0xFF800000> : vector<24xf32>
    %16 = vector.multi_reduction <maximumf>, %15, %cst_10 [1] : vector<24x24xf32> to vector<24xf32>
    %17 = vector.shape_cast %16 : vector<24xf32> to vector<24x1xf32>
    %18 = vector.broadcast %17 : vector<24x1xf32> to vector<24x24xf32>
    %19 = arith.subf %15, %18 : vector<24x24xf32>
    %20 = math.exp %19 : vector<24x24xf32>
    %cst_11 = arith.constant dense<0.000000e+00> : vector<24xf32>
    %21 = vector.multi_reduction <add>, %20, %cst_11 [1] : vector<24x24xf32> to vector<24xf32>
    %22 = vector.shape_cast %21 : vector<24xf32> to vector<24x1xf32>
    %23 = tpu.reciprocal %22 {approx = true} : vector<24x1xf32> -> vector<24x1xf32>
    %24 = vector.broadcast %23 : vector<24x1xf32> to vector<24x24xf32>
    %25 = arith.mulf %20, %24 : vector<24x24xf32>
    %cst_12 = arith.constant dense<0.000000e+00> : vector<24x128xf32>
    %26 = tpu.matmul %25, %13, %cst_12 {dimension_numbers = #tpu.dot_dimension_numbers<[1], [0], [0], [1], [0, 0, 1, 1], [], []>} : vector<24x24xf32>, vector<24x128xf32>, vector<24x128xf32> -> vector<24x128xf32>
    %27 = vector.extract_strided_slice %26 {offsets = [0, 0], sizes = [24, 16], strides = [1, 1]} : vector<24x128xf32> to vector<24x16xf32>
    %cst_13 = arith.constant dense<0.000000e+00> : vector<24x384xf32>
    %28 = tpu.matmul %27, %2, %cst_13 {dimension_numbers = #tpu.dot_dimension_numbers<[1], [0], [0], [1], [0, 0, 1, 1], [], []>} : vector<24x16xf32>, vector<16x384xf32>, vector<24x384xf32> -> vector<24x384xf32>
    %29 = vector.broadcast %5 : vector<1x384xf32> to vector<24x384xf32>
    %30 = arith.addf %28, %29 : vector<24x384xf32>
    %31 = vector.extract_strided_slice %30 {offsets = [0, 0], sizes = [24, 128], strides = [1, 1]} : vector<24x384xf32> to vector<24x128xf32>
    %32 = vector.extract_strided_slice %30 {offsets = [0, 128], sizes = [24, 128], strides = [1, 1]} : vector<24x384xf32> to vector<24x128xf32>
    %33 = vector.extract_strided_slice %30 {offsets = [0, 256], sizes = [24, 128], strides = [1, 1]} : vector<24x384xf32> to vector<24x128xf32>
    %cst_14 = arith.constant dense<0.000000e+00> : vector<24x24xf32>
    %34 = tpu.matmul %32, %31, %cst_14 {dimension_numbers = #tpu.dot_dimension_numbers<[1], [1], [0], [0], [0, 0, 1, 0], [], []>} : vector<24x128xf32>, vector<24x128xf32>, vector<24x24xf32> -> vector<24x24xf32>
    %35 = arith.addf %34, %7 : vector<24x24xf32>
    %cst_15 = arith.constant dense<0xFF800000> : vector<24xf32>
    %36 = vector.multi_reduction <maximumf>, %35, %cst_15 [1] : vector<24x24xf32> to vector<24xf32>
    %37 = vector.shape_cast %36 : vector<24xf32> to vector<24x1xf32>
    %38 = vector.broadcast %37 : vector<24x1xf32> to vector<24x24xf32>
    %39 = arith.subf %35, %38 : vector<24x24xf32>
    %40 = math.exp %39 : vector<24x24xf32>
    %cst_16 = arith.constant dense<0.000000e+00> : vector<24xf32>
    %41 = vector.multi_reduction <add>, %40, %cst_16 [1] : vector<24x24xf32> to vector<24xf32>
    %42 = vector.shape_cast %41 : vector<24xf32> to vector<24x1xf32>
    %43 = tpu.reciprocal %42 {approx = true} : vector<24x1xf32> -> vector<24x1xf32>
    %44 = vector.broadcast %43 : vector<24x1xf32> to vector<24x24xf32>
    %45 = arith.mulf %40, %44 : vector<24x24xf32>
    %cst_17 = arith.constant dense<0.000000e+00> : vector<24x128xf32>
    %46 = tpu.matmul %45, %33, %cst_17 {dimension_numbers = #tpu.dot_dimension_numbers<[1], [0], [0], [1], [0, 0, 1, 1], [], []>} : vector<24x24xf32>, vector<24x128xf32>, vector<24x128xf32> -> vector<24x128xf32>
    %47 = vector.extract_strided_slice %46 {offsets = [0, 0], sizes = [24, 16], strides = [1, 1]} : vector<24x128xf32> to vector<24x16xf32>
    %cst_18 = arith.constant dense<0.000000e+00> : vector<24x128xf32>
    %48 = tpu.matmul %47, %3, %cst_18 {dimension_numbers = #tpu.dot_dimension_numbers<[1], [0], [0], [1], [0, 0, 1, 1], [], []>} : vector<24x16xf32>, vector<16x128xf32>, vector<24x128xf32> -> vector<24x128xf32>
    %49 = vector.broadcast %6 : vector<1x128xf32> to vector<24x128xf32>
    %50 = arith.addf %48, %49 : vector<24x128xf32>
    %c0_19 = arith.constant 0 : index
    %c0_20 = arith.constant 0 : index
    %51 = vector.load %arg2[%c0_19, %c0_20] : memref<24x128xf32, #tpu.memory_space<vmem>>, vector<24x128xf32>
    tpu.vector_store %arg2[%c0_19, %c0_20], %50 {strides = array<i32>} : memref<24x128xf32, #tpu.memory_space<vmem>>, vector<24x128xf32>,
    return
  }
}

</mosaic_0001>

<bundles_post_ra>
// kernel: tpu_custom_call.1
= control target key start
LH: loop header
LB: loop body
LE: loop exit
PB: predicated region body
PF: predicated region fallthrough
CT: control target
= control target key end

     0   :  { %7 = vsyncpa [#allocation3], 0  ;;  %s1383_s0 = inlined_call_operand.vmem [shape: f32[24,8], index: 0, kind: input, shape index: {}]   ;;  %s1384_s1 = inlined_call_operand.hbm [shape: f32[72,384], index: 1, kind: input, shape index: {}]   ;;  %s1385_s2 = inlined_call_operand.hbm [shape: f32[24,128], index: 2, kind: output, shape index: {}]  }
   0x1   :  { %8 = vsyncpa [#allocation4], 0  ;;  %s1203_s9 = smov [#allocation2]   ;;  %s1155_s13 = scalar_lea.hbm %s1384_s1, 3456 }
   0x2   :  { %s16_s10 = sshll.u32 %s1203_s9, 4  ;;  %p1156_p0 = scmp.ne.s32.totalorder %s1384_s1, %s1155_s13  ;;  %s17_s10 = int_to_ptr.vmem [resolvable:$true] %s16_s10 }
   0x3   :  { %p1159_p1 = scmp.lt.u32.totalorder %s1155_s13, %s1384_s1 }
   0x5   :  { %p1161_p2 = pnand %p1159_p1, %p1156_p0 }
   0x7   :  { %1164 = shalt.err (!%p1161_p2)
}
   0x8   :  { %s1165_s18 = scalar_lea.vmem %s17_s10, 3456  ;;  %p1170_p4 = scmp.lt.s32.totalorder %s17_s10, %s17_s10 }
   0x9   :  { %p1166_p3 = scmp.ne.s32.totalorder %s17_s10, %s1165_s18  ;;  %p1171_p5 = scmp.lt.s32.totalorder %s1165_s18, %s1165_s18 }
   0xb   :  { %p1172_p6 = por %p1171_p5, %p1170_p4 }
   0xd   :  { %p1173_p7 = pnand %p1172_p6, %p1166_p3 }
   0xf   :  { %1176 = shalt.err (!%p1173_p7)
}
  0x10   :  { %s1204_s19 = smov 384   ;;  %s1205_s20 = smov 24  }
  0x11   :  { %22 = dma.hbm_to_vmem [thread:$0]  %s1384_s1, 3456, %s17_s10, [#allocation3], %s1204_s19, %s1204_s19, %s1205_s20  }
  0x12   :  { %1199 = dma.done.wait [#allocation3], 3456  }
  0x13   :  { %1200 = vsyncadd [#allocation3], 4294963840  ;;  %v1206_v0 = vmov 0.0   ;;  %v30_v1 = vld [vmem:[#allocation2 + $0x8] sm:$0xff]  ;;  %v29_v2 = vld [vmem:[#allocation2] sm:$0xff]  ;;  %vm64_vm0 = vcmask 64512   ;;  %v49_v8 = vlaneseq }
  0x14   :  { %138 = vmatprep.mubr.f32.mxu0 %v1206_v0  ;;  %999 = vmatprep.subr.mxu1 %v1206_v0  ;;  %v26_v3 = vld [vmem:[%s1383_s0] sm:$0xff]  ;;  %v27_v4 = vld [vmem:[%s1383_s0 + $0x8] sm:$0xff]  ;;  %v28_v5 = vld [vmem:[%s1383_s0 + $0x10] sm:$0xff]  ;;  %vm1207_vm1 = vmmov 0   ;;  %v1208_v7 = vmov 0.0|0.0   ;;  %vm317_vm2 = vcmask 195584  }
  0x15   :  { %74 = vmatprep.subr.mxu0 %v30_v1  ;;  %v31_v6 = vld [vmem:[#allocation2 + $0x10] sm:$0xff]  ;;  %1001 = vmatprep.mubr.msk.f32.mxu1 %vm1207_vm1, %v1206_v0  ;;  %v1270_v9 = vshrl.u32 %v49_v8, 7  ;;  %v41_v11 = vld [vmem:[#allocation2 + $0x78] ss:$8 sm:$0x7]  ;;  %vm456_vm3 = vcmask 130048  }
  0x16   :  { %75 = vmatpush1.msra.mxu0 %v29_v2  ;;  %1000 = vmatpush3.msra.mxu1 %v31_v6  ;;  %v1291_v40 = vld [vmem:[#allocation2 + $0x90] sm:$0xff]  ;;  %v1293_v42 = vld [vmem:[#allocation2 + $0xa8] sm:$0xff]  ;;  %v1296_v47 = vld [vmem:[#allocation2 + $0xc0] sm:$0xff]  ;;  %s1209_s0 = smov [#allocation5]  }
  0x17   :  { %940 = vmatmul.mubr.msk.f32.vlgmr.msra.gmra.mrb[0].mxu0 %vm64_vm0, %v26_v3  ;;  %1002 = vmatmul.mubr.msk.f32.vlgmr.msra.gmra.mrb[0].mxu1 %vm64_vm0, %v26_v3  ;;  %v51_v10 = vsub.s32 0, %v1270_v9  ;;  %v55_v22 = vsub.s32 1, %v1270_v9  ;;  %v59_v28 = vsub.s32 2, %v1270_v9  ;;  %v33_v8 = vld [vmem:[#allocation2 + $0x20] sm:$0xff]  ;;  %s928_s28 = sshll.u32 %s1209_s0, 4  ;;  %s929_s28 = int_to_ptr.vmem [resolvable:$true] %s928_s28 }
  0x18   :  { %144 = vmatprep.mubr.f32.mxu0 %v1206_v0  ;;  %1096 = vmatprep.subr.bf16.mxu0 %v1208_v7  ;;  %s1177_s29 = scalar_lea.vmem %s929_s28, 384  ;;  %p1182_p9 = scmp.lt.s32.totalorder %s929_s28, %s929_s28 }
  0x19   :  { %1118 = vmatprep.subr.bf16.mxu1 %v1208_v7  ;;  %1004 = vmatprep.mubr.msk.f32.mxu1 %vm1207_vm1, %v1206_v0  ;;  %v52_v13 = vrot.slane %v41_v11, %v51_v10  ;;  %v56_v24 = vrot.slane %v41_v11, %v55_v22  ;;  %v60_v29 = vrot.slane %v41_v11, %v59_v28  ;;  %v36_v11 = vld [vmem:[#allocation2 + $0x38] sm:$0xff]  ;;  %p1178_p8 = scmp.ne.s32.totalorder %s929_s28, %s1177_s29  ;;  %p1183_p10 = scmp.lt.s32.totalorder %s1177_s29, %s1177_s29 }
  0x1b   :  { %941 = vmatmul.mubr.msk.f32.gmra.mrb[2].mxu0 %vm64_vm0, %v27_v4  ;;  %1005 = vmatmul.mubr.msk.f32.gmra.mrb[2].mxu1 %vm64_vm0, %v27_v4  ;;  %p1184_p11 = por %p1183_p10, %p1182_p9 }
  0x1c   :  { %150 = vmatprep.mubr.f32.mxu0 %v1206_v0  ;;  %1007 = vmatprep.mubr.msk.f32.mxu1 %vm1207_vm1, %v1206_v0 }
  0x1d   :  { %p1185_p12 = pnand %p1184_p11, %p1178_p8 }
  0x1f   :  { %942 = vmatmul.mubr.msk.f32.gmra.mrb[4].mxu0 %vm64_vm0, %v28_v5  ;;  %1008 = vmatmul.mubr.msk.f32.gmra.mrb[4].mxu1 %vm64_vm0, %v28_v5 }
  0x20   :  { %1016 = vmatprep.mubr.msk.f32.mxu0 %vm1207_vm1, %v1206_v0  ;;  %1019 = vmatprep.mubr.msk.f32.mxu1 %vm1207_vm1, %v1206_v0 }
  0xea   :  { %v140_v12 = vpop.f32.mrb[0].mxu0  ;;  %v223_v30 = vpop.f32.mrb[0].mxu1 }
  0xeb   :  { %v142_v14 = vpop.f32.mrb[1].mxu0  ;;  %v141_v16 = vadd.f32 %v140_v12, %v52_v13  ;;  %v1003_v31 = vpop.f32.mrb[1].mxu1  ;;  %v224_v32 = vadd.f32 %v223_v30, %v60_v29  ;;  %v32_v12 = vld [vmem:[#allocation2 + $0x18] sm:$0xff] }
  0xec   :  { %v143_v25 = vadd.f32 %v142_v14, %v56_v24  ;;  %v35_v14 = vld [vmem:[#allocation2 + $0x30] sm:$0xff] }
  0xee   :  { %v146_v15 = vpop.f32.mrb[2].mxu0  ;;  %v228_v33 = vpop.f32.mrb[2].mxu1 }
  0xef   :  { %v147_v17 = vadd.f32 %v146_v15, %v52_v13  ;;  %v148_v18 = vpop.f32.mrb[3].mxu0  ;;  %v229_v34 = vadd.f32 %v228_v33, %v60_v29  ;;  %v1006_v35 = vpop.f32.mrb[3].mxu1  ;;  %v1104_v15 = vpack.c.bf16 %v35_v14, %v32_v12 }
  0xf0   :  { %v149_v26 = vadd.f32 %v148_v18, %v56_v24 }
  0xf1   :  { %v1097_v19 = vpack.c.bf16 %v147_v17, %v141_v16  ;;  %v1100_v36 = vpack.c.bf16 %v229_v34, %v224_v32 }
  0xf2   :  { %v152_v20 = vpop.f32.mrb[4].mxu0  ;;  %v233_v37 = vpop.f32.mrb[4].mxu1 }
  0xf3   :  { %1098 = vmatpush3.bf16.xpose.msra.mxu0 %v1097_v19  ;;  %1120 = vmatpush3.bf16.xpose.msra.mxu1 %v1097_v19  ;;  %v154_v21 = vpop.f32.mrb[5].mxu0  ;;  %v153_v23 = vadd.f32 %v152_v20, %v52_v13  ;;  %v234_v38 = vadd.f32 %v233_v37, %v60_v29  ;;  %v1009_v39 = vpop.f32.mrb[5].mxu1  ;;  %v1102_v13 = vpack.c.bf16 %v36_v11, %v33_v8  ;;  %v34_v19 = vld [vmem:[#allocation2 + $0x28] sm:$0xff]  ;;  %v37_v20 = vld [vmem:[#allocation2 + $0x40] sm:$0xff] }
  0xf4   :  { %1014 = vmatprep.subr.mxu0 %v1206_v0  ;;  %1119 = vmatprep.subr.mxu1 %v1206_v0  ;;  %v155_v27 = vadd.f32 %v154_v21, %v56_v24 }
  0xfb   :  { %1015 = vmatpush3.xpose.msra.mxu0 %v153_v23  ;;  %1121 = vmatpush3.xpose.msra.mxu1 %v153_v23  ;;  %v1107_v23 = vpack.c.bf16 %v37_v20, %v34_v19 }
  0xfc   :  { %1099 = vmatprep.subr.bf16.mxu1 %v1208_v7  ;;  %1103 = vmatprep.subr.bf16.mxu0 %v1102_v13 }
  0xfe   :  { %1017 = vmatmul.mubr.f32.vlgmr.msra.gmra.mrb[6].mxu0 %v143_v25  ;;  %1020 = vmatmul.mubr.f32.vlgmr.msra.gmra.mrb[6].mxu1 %v149_v26 }
  0xff   :  { %1022 = vmatprep.mubr.msk.f32.mxu1 %vm1207_vm1, %v1206_v0  ;;  %530 = vmatprep.mubr.f32.mxu0 %v1206_v0 }
 0x100   :  { %1101 = vmatpush3.bf16.msra.mxu1 %v1100_v36  ;;  %1105 = vmatpush1.bf16.msra.mxu0 %v1104_v15  ;;  %v43_v36 = vld [vmem:[#allocation2 + $0x79] ss:$8 sm:$0x7] }
 0x101   :  { %1029 = vmatprep.subr.mxu1 %v1206_v0  ;;  %1109 = vmatprep.subr.bf16.mxu0 %v1208_v7 }
 0x102   :  { %1023 = vmatmul.mubr.f32.gmra.mrb[8].mxu1 %v155_v27 }
 0x103   :  { %1031 = vmatprep.mubr.msk.f32.mxu1 %vm1207_vm1, %v1206_v0 }
 0x104   :  { %1030 = vmatpush3.msra.mxu1 %v234_v38 }
 0x105   :  { %1106 = vmatprep.subr.bf16.mxu1 %v1208_v7 }
 0x1d1   :  { %v303_v41 = vpop.f32.mrb[6].mxu0  ;;  %v308_v43 = vpop.f32.mrb[6].mxu1 }
 0x1d2   :  { %v304_v44 = vadd.f32 %v303_v41, %v1291_v40  ;;  %v1018_v45 = vpop.f32.mrb[7].mxu0  ;;  %v1021_v46 = vpop.f32.mrb[7].mxu1  ;;  %v309_v48 = vadd.f32 %v308_v43, %v1293_v42  ;;  %v444_v43 = vrot.slane %v43_v36, %v51_v10 }
 0x1d4   :  { %v318_v49 = vsel %vm317_vm2, %v304_v44, -inf  ;;  %v321_v54 = vsel %vm317_vm2, %v309_v48, -inf }
 0x1d5   :  { %v313_v50 = vpop.f32.mrb[8].mxu1  ;;  %319 = vmax.xlane.f32.xlu0 %v318_v49 }
 0x1d6   :  { %v314_v51 = vadd.f32 %v313_v50, %v1296_v47  ;;  %v1024_v52 = vpop.f32.mrb[9].mxu1 }
 0x1d8   :  { %v324_v53 = vsel %vm317_vm2, %v314_v51, -inf }
 0x1d9   :  { %325 = vmax.xlane.f32.xlu1 %v324_v53  ;;  %322 = vmax.xlane.f32.xlu0 %v321_v54 }
 0x262   :  { %v320_v55 = vpop.xlane.xlu0 %319 }
 0x263   :  { %v327_v56 = vsub.f32 %v304_v44, %v320_v55  ;;  %v452_v44 = vrot.slane %v43_v36, %v59_v28  ;;  %v448_v28 = vrot.slane %v43_v36, %v55_v22 }
 0x265   :  { %v330_v57 = vmul.f32 1.442695, %v327_v56 }
 0x266   :  { %v326_v58 = vpop.xlane.xlu1 %325  ;;  %v323_v59 = vpop.xlane.xlu0 %322 }
 0x267   :  { %1131 = vpow2.f32 %v330_v57  ;;  %v329_v60 = vsub.f32 %v314_v51, %v326_v58  ;;  %v328_v61 = vsub.f32 %v309_v48, %v323_v59 }
 0x269   :  { %v334_v62 = vmul.f32 1.442695, %v329_v60  ;;  %v332_v63 = vmul.f32 1.442695, %v328_v61 }
 0x26b   :  { %1133 = vpow2.f32 %v334_v62 }
 0x26c   :  { %1135 = vpow2.f32 %v332_v63 }
 0x271   :  { %v1132_v1 = vpop.eup %1131 }
 0x272   :  { %v336_v2 = vsel %vm317_vm2, %v1132_v1, 0.0 }
 0x273   :  { %337 = vadd.xlane.f32.xlu1 %v336_v2 }
 0x275   :  { %v1134_v3 = vpop.eup %1133 }
 0x276   :  { %v1136_v4 = vpop.eup %1135  ;;  %v342_v5 = vsel %vm317_vm2, %v1134_v3, 0.0 }
 0x277   :  { %343 = vadd.xlane.f32.xlu1 %v342_v5  ;;  %v339_v6 = vsel %vm317_vm2, %v1136_v4, 0.0 }
 0x278   :  { %340 = vadd.xlane.f32.xlu0 %v339_v6 }
 0x300   :  { %v338_v16 = vpop.xlane.xlu1 %337 }
 0x301   :  { %1137 = vrcp.f32 %v338_v16 }
 0x304   :  { %v344_v17 = vpop.xlane.xlu1 %343 }
 0x305   :  { %v341_v18 = vpop.xlane.xlu0 %340 }
 0x306   :  { %1139 = vrcp.f32 %v341_v18 }
 0x307   :  { %1141 = vrcp.f32 %v344_v17 }
 0x30b   :  { %v1138_v21 = vpop.eup %1137 }
 0x30c   :  { %v348_v24 = vmul.f32 %v1138_v21, %v1132_v1 }
 0x30e   :  { %1032 = vmatmul.mubr.msk.f32.vlgmr.msra.gmra.mrb[10].mxu1 %vm317_vm2, %v348_v24 }
 0x30f   :  { %1034 = vmatprep.mubr.msk.f32.mxu1 %vm1207_vm1, %v1206_v0  ;;  %1108 = vmatpush3.bf16.msra.mxu1 %v1107_v23 }
 0x310   :  { %v1140_v25 = vpop.eup %1139  ;;  %1112 = vmatprep.subr.bf16.mxu1 %v1208_v7 }
 0x311   :  { %v349_v26 = vmul.f32 %v1140_v25, %v1136_v4  ;;  %v1142_v27 = vpop.eup %1141 }
 0x312   :  { %v350_v29 = vmul.f32 %v1142_v27, %v1134_v3  ;;  %v39_v27 = vld [vmem:[#allocation2 + $0x60] sm:$0xff] }
 0x313   :  { %1035 = vmatmul.mubr.msk.f32.gmra.mrb[12].mxu1 %vm317_vm2, %v349_v26  ;;  %v38_v26 = vld [vmem:[#allocation2 + $0x48] sm:$0xff] }
 0x314   :  { %1037 = vmatprep.mubr.msk.f32.mxu1 %vm1207_vm1, %v1206_v0 }
 0x317   :  { %1038 = vmatmul.mubr.msk.f32.gmra.mrb[14].mxu1 %vm317_vm2, %v350_v29  ;;  %v1116_v29 = vpack.c.bf16 %v39_v27, %v38_v26 }
 0x318   :  { %1044 = vmatprep.mubr.msk.f32.mxu1 %vm1207_vm1, %v1206_v0 }
 0x3e1   :  { %v426_v30 = vpop.f32.mrb[10].mxu1 }
 0x3e2   :  { %v1033_v31 = vpop.f32.mrb[11].mxu1  ;;  %949 = vmatmul.mubr.msk.f32.vlgmr.msra.gmra.mrb[8].mxu0 %vm456_vm3, %v426_v30  ;;  %1045 = vmatmul.mubr.msk.f32.vlgmr.msra.gmra.mrb[16].mxu1 %vm456_vm3, %v426_v30 }
 0x3e3   :  { %536 = vmatprep.mubr.f32.mxu0 %v1206_v0  ;;  %1047 = vmatprep.mubr.msk.f32.mxu1 %vm1207_vm1, %v1206_v0 }
 0x3e6   :  { %v431_v32 = vpop.f32.mrb[12].mxu1 }
 0x3e7   :  { %v1036_v33 = vpop.f32.mrb[13].mxu1  ;;  %950 = vmatmul.mubr.msk.f32.gmra.mrb[10].mxu0 %vm456_vm3, %v431_v32  ;;  %1048 = vmatmul.mubr.msk.f32.gmra.mrb[18].mxu1 %vm456_vm3, %v431_v32 }
 0x3e8   :  { %542 = vmatprep.mubr.f32.mxu0 %v1206_v0  ;;  %1050 = vmatprep.mubr.msk.f32.mxu1 %vm1207_vm1, %v1206_v0 }
 0x3ea   :  { %v436_v34 = vpop.f32.mrb[14].mxu1 }
 0x3eb   :  { %v1039_v35 = vpop.f32.mrb[15].mxu1  ;;  %951 = vmatmul.mubr.msk.f32.gmra.mrb[12].mxu0 %vm456_vm3, %v436_v34  ;;  %1051 = vmatmul.mubr.msk.f32.gmra.mrb[20].mxu1 %vm456_vm3, %v436_v34 }
 0x3ec   :  { %1059 = vmatprep.mubr.msk.f32.mxu0 %vm1207_vm1, %v1206_v0  ;;  %1074 = vmatprep.mubr.msk.f32.mxu1 %vm1207_vm1, %v1206_v0 }
 0x4b5   :  { %v532_v37 = vpop.f32.mrb[8].mxu0  ;;  %v615_v38 = vpop.f32.mrb[16].mxu1 }
 0x4b6   :  { %v534_v39 = vpop.f32.mrb[9].mxu0  ;;  %v1046_v41 = vpop.f32.mrb[17].mxu1  ;;  %v533_v48 = vadd.f32 %v532_v37, %v444_v43  ;;  %v616_v49 = vadd.f32 %v615_v38, %v452_v44 }
 0x4b7   :  { %v535_v61 = vadd.f32 %v534_v39, %v448_v28 }
 0x4ba   :  { %v538_v45 = vpop.f32.mrb[10].mxu0  ;;  %v620_v46 = vpop.f32.mrb[18].mxu1 }
 0x4bb   :  { %v539_v50 = vadd.f32 %v538_v45, %v444_v43  ;;  %v621_v51 = vadd.f32 %v620_v46, %v452_v44  ;;  %v540_v52 = vpop.f32.mrb[11].mxu0  ;;  %v1049_v53 = vpop.f32.mrb[19].mxu1 }
 0x4bc   :  { %v541_v62 = vadd.f32 %v540_v52, %v448_v28 }
 0x4bd   :  { %v1110_v54 = vpack.c.bf16 %v539_v50, %v533_v48  ;;  %v1113_v55 = vpack.c.bf16 %v621_v51, %v616_v49  ;;  %v44_v48 = vld [vmem:[#allocation2 + $0x7a] ss:$0 sm:$0xff] }
 0x4be   :  { %v544_v56 = vpop.f32.mrb[12].mxu0  ;;  %v625_v57 = vpop.f32.mrb[20].mxu1 }
 0x4bf   :  { %v546_v58 = vpop.f32.mrb[13].mxu0  ;;  %v1052_v59 = vpop.f32.mrb[21].mxu1  ;;  %1111 = vmatpush3.bf16.xpose.msra.mxu0 %v1110_v54  ;;  %1114 = vmatpush3.bf16.msra.mxu1 %v1113_v55  ;;  %v626_v10 = vadd.f32 %v625_v57, %v452_v44  ;;  %v545_v60 = vadd.f32 %v544_v56, %v444_v43 }
 0x4c0   :  { %1072 = vmatprep.subr.mxu1 %v1206_v0  ;;  %1057 = vmatprep.subr.mxu0 %v1206_v0  ;;  %v547_v63 = vadd.f32 %v546_v58, %v448_v28 }
 0x4c3   :  { %1073 = vmatpush3.msra.mxu1 %v626_v10 }
 0x4c7   :  { %1058 = vmatpush3.xpose.msra.mxu0 %v545_v60 }
 0x4c8   :  { %1115 = vmatprep.subr.bf16.mxu0 %v1208_v7 }
 0x4ca   :  { %1060 = vmatmul.mubr.f32.vlgmr.msra.gmra.mrb[14].mxu0 %v535_v61 }
 0x4cb   :  { %1062 = vmatprep.mubr.msk.f32.mxu0 %vm1207_vm1, %v1206_v0  ;;  %1117 = vmatpush3.bf16.msra.mxu0 %v1116_v29 }
 0x4ce   :  { %1063 = vmatmul.mubr.f32.gmra.mrb[16].mxu0 %v541_v62 }
 0x4cf   :  { %1065 = vmatprep.mubr.msk.f32.mxu0 %vm1207_vm1, %v1206_v0 }
 0x4d2   :  { %1066 = vmatmul.mubr.f32.gmra.mrb[18].mxu0 %v547_v63 }
 0x4d3   :  { %1087 = vmatprep.mubr.msk.f32.mxu0 %vm1207_vm1, %v1206_v0 }
 0x59d   :  { %v695_v9 = vpop.f32.mrb[14].mxu0 }
 0x59e   :  { %v696_v22 = vadd.f32 %v695_v9, %v1291_v40  ;;  %v1061_v1 = vpop.f32.mrb[15].mxu0 }
 0x5a0   :  { %v709_v7 = vsel %vm317_vm2, %v696_v22, -inf }
 0x5a1   :  { %710 = vmax.xlane.f32.xlu0 %v709_v7  ;;  %v700_v2 = vpop.f32.mrb[16].mxu0 }
 0x5a2   :  { %v701_v3 = vadd.f32 %v700_v2, %v1293_v42  ;;  %v1064_v4 = vpop.f32.mrb[17].mxu0 }
 0x5a4   :  { %v712_v5 = vsel %vm317_vm2, %v701_v3, -inf }
 0x5a5   :  { %713 = vmax.xlane.f32.xlu1 %v712_v5  ;;  %v705_v6 = vpop.f32.mrb[18].mxu0 }
 0x5a6   :  { %v706_v8 = vadd.f32 %v705_v6, %v1296_v47  ;;  %v1067_v11 = vpop.f32.mrb[19].mxu0 }
 0x5a8   :  { %v715_v12 = vsel %vm317_vm2, %v706_v8, -inf }
 0x5a9   :  { %716 = vmax.xlane.f32.xlu0 %v715_v12 }
 0x62e   :  { %v711_v13 = vpop.xlane.xlu0 %710 }
 0x62f   :  { %v718_v40 = vsub.f32 %v696_v22, %v711_v13 }
 0x631   :  { %v721_v14 = vmul.f32 1.442695, %v718_v40 }
 0x632   :  { %v714_v15 = vpop.xlane.xlu1 %713 }
 0x633   :  { %1143 = vpow2.f32 %v721_v14  ;;  %v719_v16 = vsub.f32 %v701_v3, %v714_v15 }
 0x635   :  { %v723_v17 = vmul.f32 1.442695, %v719_v16 }
 0x636   :  { %v717_v18 = vpop.xlane.xlu0 %716 }
 0x637   :  { %1145 = vpow2.f32 %v723_v17  ;;  %v720_v42 = vsub.f32 %v706_v8, %v717_v18 }
 0x639   :  { %v725_v19 = vmul.f32 1.442695, %v720_v42 }
 0x63b   :  { %1147 = vpow2.f32 %v725_v19 }
 0x63d   :  { %v1144_v20 = vpop.eup %1143 }
 0x63e   :  { %v727_v21 = vsel %vm317_vm2, %v1144_v20, 0.0 }
 0x63f   :  { %728 = vadd.xlane.f32.xlu1 %v727_v21 }
 0x641   :  { %v1146_v47 = vpop.eup %1145 }
 0x642   :  { %v730_v23 = vsel %vm317_vm2, %v1146_v47, 0.0 }
 0x643   :  { %731 = vadd.xlane.f32.xlu0 %v730_v23 }
 0x645   :  { %v1148_v24 = vpop.eup %1147 }
 0x646   :  { %v733_v25 = vsel %vm317_vm2, %v1148_v24, 0.0 }
 0x647   :  { %734 = vadd.xlane.f32.xlu1 %v733_v25 }
 0x6cc   :  { %v729_v30 = vpop.xlane.xlu1 %728 }
 0x6cd   :  { %1149 = vrcp.f32 %v729_v30 }
 0x6d0   :  { %v732_v31 = vpop.xlane.xlu0 %731 }
 0x6d1   :  { %1151 = vrcp.f32 %v732_v31 }
 0x6d4   :  { %v735_v32 = vpop.xlane.xlu1 %734 }
 0x6d5   :  { %1153 = vrcp.f32 %v735_v32 }
 0x6d7   :  { %v1150_v33 = vpop.eup %1149 }
 0x6d8   :  { %v739_v34 = vmul.f32 %v1150_v33, %v1144_v20 }
 0x6da   :  { %1075 = vmatmul.mubr.msk.f32.vlgmr.msra.gmra.mrb[22].mxu1 %vm317_vm2, %v739_v34 }
 0x6db   :  { %v1152_v35 = vpop.eup %1151  ;;  %1077 = vmatprep.mubr.msk.f32.mxu1 %vm1207_vm1, %v1206_v0 }
 0x6dc   :  { %v740_v36 = vmul.f32 %v1152_v35, %v1146_v47 }
 0x6de   :  { %1078 = vmatmul.mubr.msk.f32.gmra.mrb[24].mxu1 %vm317_vm2, %v740_v36 }
 0x6df   :  { %v1154_v37 = vpop.eup %1153  ;;  %1080 = vmatprep.mubr.msk.f32.mxu1 %vm1207_vm1, %v1206_v0 }
 0x6e0   :  { %v741_v38 = vmul.f32 %v1154_v37, %v1148_v24 }
 0x6e2   :  { %1081 = vmatmul.mubr.msk.f32.gmra.mrb[26].mxu1 %vm317_vm2, %v741_v38 }
 0x7ad   :  { %v817_v39 = vpop.f32.mrb[22].mxu1 }
 0x7ae   :  { %v1076_v41 = vpop.f32.mrb[23].mxu1  ;;  %1088 = vmatmul.mubr.msk.f32.vlgmr.msra.gmra.mrb[20].mxu0 %vm456_vm3, %v817_v39 }
 0x7af   :  { %1090 = vmatprep.mubr.msk.f32.mxu0 %vm1207_vm1, %v1206_v0 }
 0x7b1   :  { %v822_v43 = vpop.f32.mrb[24].mxu1 }
 0x7b2   :  { %v1079_v44 = vpop.f32.mrb[25].mxu1  ;;  %1091 = vmatmul.mubr.msk.f32.gmra.mrb[22].mxu0 %vm456_vm3, %v822_v43 }
 0x7b3   :  { %1093 = vmatprep.mubr.msk.f32.mxu0 %vm1207_vm1, %v1206_v0 }
 0x7b5   :  { %v827_v45 = vpop.f32.mrb[26].mxu1 }
 0x7b6   :  { %v1082_v46 = vpop.f32.mrb[27].mxu1  ;;  %1094 = vmatmul.mubr.msk.f32.gmra.mrb[24].mxu0 %vm456_vm3, %v827_v45 }
 0x881   :  { %v906_v49 = vpop.f32.mrb[20].mxu0 }
 0x882   :  { %v907_v50 = vadd.f32 %v906_v49, %v44_v48  ;;  %v1089_v51 = vpop.f32.mrb[21].mxu0 }
 0x884   :  { %920 = vst [vmem:[#allocation5] sm:$0xff] %v907_v50 }
 0x885   :  { %v911_v52 = vpop.f32.mrb[22].mxu0 }
 0x886   :  { %v912_v53 = vadd.f32 %v911_v52, %v44_v48  ;;  %v1092_v54 = vpop.f32.mrb[23].mxu0 }
 0x888   :  { %921 = vst [vmem:[#allocation5 + $0x8] sm:$0xff] %v912_v53 }
 0x889   :  { %v916_v55 = vpop.f32.mrb[24].mxu0 }
 0x88a   :  { %v917_v56 = vadd.f32 %v916_v55, %v44_v48  ;;  %v1095_v57 = vpop.f32.mrb[25].mxu0 }
 0x88c   :  { %922 = vst [vmem:[#allocation5 + $0x10] sm:$0xff] %v917_v56 }
 0x88d   :  { %1188 = shalt.err (!%p1185_p12)
}
 0x88e   :  { %s1189_s4 = scalar_lea.hbm %s1385_s2, 384 }
 0x88f   :  { %p1190_p13 = scmp.ne.s32.totalorder %s1385_s2, %s1189_s4  ;;  %p1193_p0 = scmp.lt.u32.totalorder %s1189_s4, %s1385_s2 }
 0x891   :  { %p1195_p1 = pnand %p1193_p0, %p1190_p13 }
 0x893   :  { %1198 = shalt.err (!%p1195_p1)
}
 0x894   :  { %s1210_s9 = smov 128   ;;  %s1211_s10 = smov 8  }
 0x895   :  { %934 = dma.vmem_to_hbm [thread:$0]  %s929_s28, 384, %s1385_s2, [#allocation4], %s1210_s9, %s1210_s9, %s1211_s10  }
 0x896   :  { %1201 = dma.done.wait [#allocation4], 384  }
 0x897   :  { %1202 = vsyncadd [#allocation4], 4294966912 }
 0x898   :  { %938 = vsyncpa [#allocation3], 1 }
 0x899   :  { %939 = vsyncpa [#allocation4], 1 }

</bundles_post_ra>
